<compile_context>
chip_gen: v7x
topology: tpu7x:2x2x1
jax: 0.10.0
libtpu: 0.0.40
codegen_flags: <defaults>
</compile_context>

<pallas_src>
import jax
import jax.numpy as jnp
from jax import lax
from jax.experimental import pallas as pl
from jax.experimental.pallas import tpu as pltpu

BN_EPS = 1e-5


def _pad8(n):
    return ((n + 7) // 8) * 8


def _pad128(n):
    return ((n + 127) // 128) * 128


def _vmem_kwargs(est_bytes):
    # v5e's default scoped-VMEM limit is 16 MiB (v6e/v7x: 32 MiB). Raise the
    # limit whenever our padded, double-buffered estimate gets close, and stay
    # well under v7x's 64 MiB physical VMEM.
    if est_bytes > (12 << 20):
        return {"vmem_limit_bytes": int(min(est_bytes + (4 << 20), 56 << 20))}
    return {}


# ---------------------------------------------------------------------------
# 1x1 convolution = row-tiled matmul over flattened NHWC pixels, with the
# folded BatchNorm affine + ReLU (and optionally the residual add) fused in.
# x2d: (M, Cin)  w: (Cin, Cout)  sb: (2, Cout) [scale; bias]  res: (M, Cout)
# ---------------------------------------------------------------------------
def _pw_bn_relu_kernel(x_ref, w_ref, sb_ref, o_ref):
    acc = jnp.dot(x_ref[...].astype(jnp.float32), w_ref[...].astype(jnp.float32),
                  preferred_element_type=jnp.float32)
    sb = sb_ref[...].astype(jnp.float32)
    y = acc * sb[0, :] + sb[1, :]
    o_ref[...] = jnp.maximum(y, 0.0).astype(o_ref.dtype)


def _pw_bn_add_relu_kernel(x_ref, w_ref, sb_ref, res_ref, o_ref):
    acc = jnp.dot(x_ref[...].astype(jnp.float32), w_ref[...].astype(jnp.float32),
                  preferred_element_type=jnp.float32)
    sb = sb_ref[...].astype(jnp.float32)
    y = acc * sb[0, :] + sb[1, :] + res_ref[...].astype(jnp.float32)
    o_ref[...] = jnp.maximum(y, 0.0).astype(o_ref.dtype)


def _row_tile(m, cin, cout, budget_bytes):
    # Budget covers: double-buffered input rows + double-buffered output rows
    # + an f32 accumulator row (all lane-padded).
    per_row = 4 * (2 * _pad128(cin) + 3 * _pad128(cout))
    tm = budget_bytes // max(per_row, 1)
    tm = int(max(8, min(m, tm)))
    if tm >= m:
        return m
    return max(8, (tm // 8) * 8)


def _pointwise_conv(x2d, w, sb, residual=None, *, block_budget_bytes=8 << 20):
    m, cin = x2d.shape
    cout = w.shape[1]
    tm = _row_tile(m, cin, cout, block_budget_bytes)
    grid = (pl.cdiv(m, tm),)  # ragged tail is masked by Pallas

    in_specs = [
        pl.BlockSpec((tm, cin), lambda i: (i, 0)),
        pl.BlockSpec((cin, cout), lambda i: (0, 0)),  # resident weight
        pl.BlockSpec((2, cout), lambda i: (0, 0)),    # stacked scale/bias slab
    ]
    args = [x2d, w, sb]
    kernel = _pw_bn_relu_kernel
    if residual is not None:
        in_specs.append(pl.BlockSpec((tm, cout), lambda i: (i, 0)))
        args.append(residual)
        kernel = _pw_bn_add_relu_kernel

    ib = x2d.dtype.itemsize
    est = (2 * _pad8(tm) * _pad128(cin) * ib                       # x blocks
           + 2 * _pad8(cin) * _pad128(cout) * w.dtype.itemsize     # weight
           + 2 * _pad8(2) * _pad128(cout) * 4                      # scale/bias
           + (4 if residual is not None else 2) * _pad8(tm) * _pad128(cout) * ib
           + _pad8(tm) * _pad128(cout) * 4                         # f32 acc
           + (1 << 20))                                            # headroom

    return pl.pallas_call(
        kernel,
        out_shape=jax.ShapeDtypeStruct((m, cout), x2d.dtype),
        grid_spec=pltpu.PrefetchScalarGridSpec(
            num_scalar_prefetch=0,
            grid=grid,
            in_specs=in_specs,
            out_specs=pl.BlockSpec((tm, cout), lambda i: (i, 0)),
        ),
        compiler_params=pltpu.CompilerParams(
            dimension_semantics=("parallel",), **_vmem_kwargs(est)),
    )(*args)


# ---------------------------------------------------------------------------
# 3x3 convolution (stride=1, padding=1, NHWC) as nine shifted matmuls over a
# zero-padded per-sample block, with conv-bias + BatchNorm + ReLU fused in.
# xp: (N, H+2, W+2, C) zero-padded   w9: (9, C, C)   sb: (2, C)
# ---------------------------------------------------------------------------
def _conv3x3_bn_relu_kernel(xp_ref, w_ref, sb_ref, o_ref):
    _, hout, wout, c = o_ref.shape
    xw = xp_ref[0].astype(jnp.float32)              # (H+2, W+2, C)
    acc = jnp.zeros((hout * wout, c), jnp.float32)
    for kh in range(3):
        for kw in range(3):
            patch = xw[kh:kh + hout, kw:kw + wout, :].reshape(hout * wout, c)
            acc = acc + jnp.dot(patch, w_ref[kh * 3 + kw].astype(jnp.float32),
                                preferred_element_type=jnp.float32)
    sb = sb_ref[...].astype(jnp.float32)
    y = jnp.maximum(acc * sb[0, :] + sb[1, :], 0.0)
    o_ref[...] = y.reshape(o_ref.shape).astype(o_ref.dtype)


def _conv3x3_bn_relu(xp, w9, sb, hout, wout):
    n, hp, wp, c = xp.shape
    ib = xp.dtype.itemsize
    est = (2 * hp * _pad8(wp) * _pad128(c) * ib               # padded input blocks
           + 2 * 9 * _pad8(c) * _pad128(c) * w9.dtype.itemsize
           + 2 * _pad8(2) * _pad128(c) * 4
           + 2 * hout * _pad8(wout) * _pad128(c) * ib         # output blocks
           + 2 * hp * _pad8(wp) * _pad128(c) * 4              # f32 copy + acc
           + (1 << 20))
    # TODO(synk): for very large spatial stages a halo'd row-tiling of H would
    # reduce the per-sample VMEM footprint; ResNet-50 stage shapes fit as-is.
    return pl.pallas_call(
        _conv3x3_bn_relu_kernel,
        out_shape=jax.ShapeDtypeStruct((n, hout, wout, c), xp.dtype),
        grid_spec=pltpu.PrefetchScalarGridSpec(
            num_scalar_prefetch=0,
            grid=(n,),
            in_specs=[
                pl.BlockSpec((1, hp, wp, c), lambda i: (i, 0, 0, 0)),
                pl.BlockSpec((9, c, c), lambda i: (0, 0, 0)),
                pl.BlockSpec((2, c), lambda i: (0, 0)),
            ],
            out_specs=pl.BlockSpec((1, hout, wout, c), lambda i: (i, 0, 0, 0)),
        ),
        compiler_params=pltpu.CompilerParams(
            dimension_semantics=("parallel",), **_vmem_kwargs(est)),
    )(xp, w9, sb)


# ---------------------------------------------------------------------------
# Bottleneck forward (eval-mode BatchNorm folded into per-channel scale/bias).
# x: (N, C_in, H, W) NCHW like the PyTorch module.
# ---------------------------------------------------------------------------
def bottleneck_forward(x, params):
    n, cin, h, w = x.shape
    cmid = params["w1"].shape[0]
    cexp = params["w3"].shape[0]
    # TODO(synk): stride>1 and the optional `downsample` branch are not
    # implemented; this covers the default Bottleneck(...) with stride=1,
    # downsample=None (requires inplanes == expansion * outplanes).
    assert cexp == cin, "residual add requires inplanes == expansion*outplanes"

    # Fold eval-mode BN (and conv2's bias) into (2, C) scale/bias slabs.
    s1 = params["bn1_g"] / jnp.sqrt(params["bn1_v"] + BN_EPS)
    sb1 = jnp.stack([s1, params["bn1_b"] - params["bn1_m"] * s1]).astype(jnp.float32)
    s2 = params["bn2_g"] / jnp.sqrt(params["bn2_v"] + BN_EPS)
    sb2 = jnp.stack([s2, (params["b2"] - params["bn2_m"]) * s2 + params["bn2_b"]]
                    ).astype(jnp.float32)
    s3 = params["bn3_g"] / jnp.sqrt(params["bn3_v"] + BN_EPS)
    sb3 = jnp.stack([s3, params["bn3_b"] - params["bn3_m"] * s3]).astype(jnp.float32)

    # Weights rearranged for NHWC matmuls: (Cin, Cout) and (9, Cmid, Cmid).
    w1t = params["w1"].reshape(cmid, cin).T
    w2s = jnp.transpose(params["w2"], (2, 3, 1, 0)).reshape(9, cmid, cmid)
    w3t = params["w3"].reshape(cexp, cmid).T

    # NHWC layout: channels on the 128-lane axis.
    x_nhwc = jnp.transpose(x, (0, 2, 3, 1))
    x2d = x_nhwc.reshape(n * h * w, cin)

    h1 = _pointwise_conv(x2d, w1t, sb1)                               # conv1+bn1+relu
    h1p = jnp.pad(h1.reshape(n, h, w, cmid), ((0, 0), (1, 1), (1, 1), (0, 0)))
    h2 = _conv3x3_bn_relu(h1p, w2s, sb2, h, w)                        # conv2+bn2+relu
    out2d = _pointwise_conv(h2.reshape(n * h * w, cmid), w3t, sb3,
                            residual=x2d)                             # conv3+bn3+add+relu
    return jnp.transpose(out2d.reshape(n, h, w, cexp), (0, 3, 1, 2))


def bottleneck_reference(x, p):
    """Pure-JAX reference matching the PyTorch Bottleneck.forward (eval-mode BN)."""
    dn = ("NCHW", "OIHW", "NCHW")

    def bn(y, g, b, m, v):
        s = (g / jnp.sqrt(v + BN_EPS))[None, :, None, None]
        return (y - m[None, :, None, None]) * s + b[None, :, None, None]

    out = lax.conv_general_dilated(x, p["w1"], (1, 1), "VALID", dimension_numbers=dn)
    out = jnp.maximum(bn(out, p["bn1_g"], p["bn1_b"], p["bn1_m"], p["bn1_v"]), 0.0)
    out = lax.conv_general_dilated(out, p["w2"], (1, 1), ((1, 1), (1, 1)),
                                   dimension_numbers=dn)
    out = out + p["b2"][None, :, None, None]
    out = jnp.maximum(bn(out, p["bn2_g"], p["bn2_b"], p["bn2_m"], p["bn2_v"]), 0.0)
    out = lax.conv_general_dilated(out, p["w3"], (1, 1), "VALID", dimension_numbers=dn)
    out = bn(out, p["bn3_g"], p["bn3_b"], p["bn3_m"], p["bn3_v"])
    return jnp.maximum(out + x, 0.0)


if __name__ == "__main__":
    key = jax.random.PRNGKey(0)
    ks = jax.random.split(key, 17)

    N, INPLANES, OUTPLANES, H, W = 2, 16, 4, 16, 16
    EXPANSION = 4
    CEXP = OUTPLANES * EXPANSION  # == INPLANES so the residual add is valid

    x = jax.random.normal(ks[0], (N, INPLANES, H, W), jnp.float32)
    params = {
        "w1": 0.3 * jax.random.normal(ks[1], (OUTPLANES, INPLANES, 1, 1), jnp.float32),
        "w2": 0.3 * jax.random.normal(ks[2], (OUTPLANES, OUTPLANES, 3, 3), jnp.float32),
        "b2": 0.1 * jax.random.normal(ks[3], (OUTPLANES,), jnp.float32),
        "w3": 0.3 * jax.random.normal(ks[4], (CEXP, OUTPLANES, 1, 1), jnp.float32),
        "bn1_g": 1.0 + 0.1 * jax.random.normal(ks[5], (OUTPLANES,), jnp.float32),
        "bn1_b": 0.1 * jax.random.normal(ks[6], (OUTPLANES,), jnp.float32),
        "bn1_m": 0.1 * jax.random.normal(ks[7], (OUTPLANES,), jnp.float32),
        "bn1_v": jax.random.uniform(ks[8], (OUTPLANES,), jnp.float32, 0.5, 1.5),
        "bn2_g": 1.0 + 0.1 * jax.random.normal(ks[9], (OUTPLANES,), jnp.float32),
        "bn2_b": 0.1 * jax.random.normal(ks[10], (OUTPLANES,), jnp.float32),
        "bn2_m": 0.1 * jax.random.normal(ks[11], (OUTPLANES,), jnp.float32),
        "bn2_v": jax.random.uniform(ks[12], (OUTPLANES,), jnp.float32, 0.5, 1.5),
        "bn3_g": 1.0 + 0.1 * jax.random.normal(ks[13], (CEXP,), jnp.float32),
        "bn3_b": 0.1 * jax.random.normal(ks[14], (CEXP,), jnp.float32),
        "bn3_m": 0.1 * jax.random.normal(ks[15], (CEXP,), jnp.float32),
        "bn3_v": jax.random.uniform(ks[16], (CEXP,), jnp.float32, 0.5, 1.5),
    }

    out = bottleneck_forward(x, params)
    out = jax.block_until_ready(out)

    ref = bottleneck_reference(x, params)
    assert out.shape == ref.shape
    assert jnp.allclose(out, ref, atol=1e-4, rtol=1e-4), "mismatch vs reference"

    print("KERNEL_OK")
</pallas_src>

<mosaic_0001>
module attributes {stable_mosaic.version = 11 : i64} {
  func.func @_pw_bn_relu_kernel(%arg0: i32, %arg1: memref<512x16xf32, #tpu.memory_space<vmem>>, %arg2: memref<16x4xf32, #tpu.memory_space<vmem>>, %arg3: memref<2x4xf32, #tpu.memory_space<vmem>>, %arg4: memref<512x4xf32, #tpu.memory_space<vmem>>) attributes {dimension_semantics = [#tpu.dimension_semantics<parallel>], iteration_bounds = array<i64: 1>, scalar_prefetch = 0 : i64, scratch_operands = 0 : i64, tpu.core_type = #tpu.core_type<tc>, window_params = [{transform_indices = @transform_0, window_bounds = array<i64: 512, 16>}, {pipeline_mode = #tpu.pipeline_mode<synchronous>, transform_indices = @transform_1, window_bounds = array<i64: 16, 4>}, {pipeline_mode = #tpu.pipeline_mode<synchronous>, transform_indices = @transform_2, window_bounds = array<i64: 2, 4>}, {transform_indices = @transform_3, window_bounds = array<i64: 512, 4>}]} {
    %c0 = arith.constant 0 : index
    %c0_0 = arith.constant 0 : index
    %0 = vector.load %arg1[%c0, %c0_0] : memref<512x16xf32, #tpu.memory_space<vmem>>, vector<512x16xf32>
    %c0_1 = arith.constant 0 : index
    %c0_2 = arith.constant 0 : index
    %1 = vector.load %arg2[%c0_1, %c0_2] : memref<16x4xf32, #tpu.memory_space<vmem>>, vector<16x4xf32>
    %cst = arith.constant dense<0.000000e+00> : vector<512x4xf32>
    %2 = tpu.matmul %0, %1, %cst {dimension_numbers = #tpu.dot_dimension_numbers<[1], [0], [0], [1], [0, 0, 1, 1], [], []>} : vector<512x16xf32>, vector<16x4xf32>, vector<512x4xf32> -> vector<512x4xf32>
    %c0_3 = arith.constant 0 : index
    %c0_4 = arith.constant 0 : index
    %3 = vector.load %arg3[%c0_3, %c0_4] : memref<2x4xf32, #tpu.memory_space<vmem>>, vector<2x4xf32>
    %4 = vector.extract_strided_slice %3 {offsets = [0, 0], sizes = [1, 4], strides = [1, 1]} : vector<2x4xf32> to vector<1x4xf32>
    %5 = vector.shape_cast %4 : vector<1x4xf32> to vector<4xf32>
    %6 = vector.shape_cast %5 : vector<4xf32> to vector<1x4xf32>
    %7 = vector.broadcast %6 : vector<1x4xf32> to vector<512x4xf32>
    %8 = arith.mulf %2, %7 : vector<512x4xf32>
    %9 = vector.extract_strided_slice %3 {offsets = [1, 0], sizes = [1, 4], strides = [1, 1]} : vector<2x4xf32> to vector<1x4xf32>
    %10 = vector.shape_cast %9 : vector<1x4xf32> to vector<4xf32>
    %11 = vector.shape_cast %10 : vector<4xf32> to vector<1x4xf32>
    %12 = vector.broadcast %11 : vector<1x4xf32> to vector<512x4xf32>
    %13 = arith.addf %8, %12 : vector<512x4xf32>
    %cst_5 = arith.constant 0.000000e+00 : f32
    %14 = vector.broadcast %cst_5 : f32 to vector<512x4xf32>
    %15 = arith.maximumf %13, %14 : vector<512x4xf32>
    %c0_6 = arith.constant 0 : index
    %c0_7 = arith.constant 0 : index
    %16 = vector.load %arg4[%c0_6, %c0_7] : memref<512x4xf32, #tpu.memory_space<vmem>>, vector<512x4xf32>
    tpu.vector_store %arg4[%c0_6, %c0_7], %15 {strides = array<i32>} : memref<512x4xf32, #tpu.memory_space<vmem>>, vector<512x4xf32>,
    return
  }
  func.func @transform_0(%arg0: i32) -> (i32, i32) {
    %c0_i32 = arith.constant 0 : i32
    %c0_i32_0 = arith.constant 0 : i32
    return %arg0, %c0_i32 : i32, i32
  }
  func.func @transform_1(%arg0: i32) -> (i32, i32) {
    %c0_i32 = arith.constant 0 : i32
    %c0_i32_0 = arith.constant 0 : i32
    %c0_i32_1 = arith.constant 0 : i32
    return %c0_i32, %c0_i32_0 : i32, i32
  }
  func.func @transform_2(%arg0: i32) -> (i32, i32) {
    %c0_i32 = arith.constant 0 : i32
    %c0_i32_0 = arith.constant 0 : i32
    %c0_i32_1 = arith.constant 0 : i32
    return %c0_i32, %c0_i32_0 : i32, i32
  }
  func.func @transform_3(%arg0: i32) -> (i32, i32) {
    %c0_i32 = arith.constant 0 : i32
    %c0_i32_0 = arith.constant 0 : i32
    return %arg0, %c0_i32 : i32, i32
  }
}

</mosaic_0001>

<bundles_post_ra>
// kernel: tpu_custom_call.1
= control target key start
LH: loop header
LB: loop body
LE: loop exit
PB: predicated region body
PF: predicated region fallthrough
CT: control target
= control target key end

     0   :  { %vm80_vm0 = vcmask 130048   ;;  %vm859_vm1 = vcmask 31744   ;;  %s1837_s1 = inlined_call_operand.vmem [shape: f32[16,4], index: 1, kind: input, shape index: {}]   ;;  %s1838_s0 = inlined_call_operand.vmem [shape: f32[512,16], index: 0, kind: input, shape index: {}]   ;;  %s1839_s2 = inlined_call_operand.vmem [shape: f32[2,4], index: 2, kind: input, shape index: {}]   ;;  %s1840_s3 = inlined_call_operand.vmem [shape: f32[512,4], index: 3, kind: output, shape index: {}]  }
   0x1   :  { %v78_v0 = vld [vmem:[%s1837_s1] sm:$0xff]  ;;  %v79_v1 = vld [vmem:[%s1837_s1 + $0x8] sm:$0xff]  ;;  %v16_v7 = vld [vmem:[%s1838_s0 + $0x10] sm:$0xff] }
   0x2   :  { %v14_v2 = vld [vmem:[%s1838_s0] sm:$0xff]  ;;  %v1158_v3 = vpack.c.bf16 %v79_v1, %v78_v0  ;;  %v15_v5 = vld [vmem:[%s1838_s0 + $0x8] sm:$0xff]  ;;  %v48_v8 = vld [vmem:[%s1838_s0 + $0x110] sm:$0xff] }
   0x3   :  { %1062 = vmatprep.mubr.msk.f32.mxu0 %vm80_vm0, %v14_v2  ;;  %v46_v4 = vld [vmem:[%s1838_s0 + $0x100] sm:$0xff]  ;;  %v47_v6 = vld [vmem:[%s1838_s0 + $0x108] sm:$0xff]  ;;  %v17_v9 = vld [vmem:[%s1838_s0 + $0x18] sm:$0xff] }
   0x4   :  { %1110 = vmatprep.mubr.msk.f32.mxu1 %vm80_vm0, %v46_v4  ;;  %1159 = vmatprep.subr.bf16.mxu0 %v1158_v3  ;;  %v49_v10 = vld [vmem:[%s1838_s0 + $0x118] sm:$0xff]  ;;  %v18_v11 = vld [vmem:[%s1838_s0 + $0x20] sm:$0xff]  ;;  %v19_v13 = vld [vmem:[%s1838_s0 + $0x28] sm:$0xff] }
   0x5   :  { %1162 = vmatprep.subr.bf16.mxu1 %v1158_v3  ;;  %1161 = vmatpush3.bf16.msra.mxu0 %v1158_v3  ;;  %v50_v12 = vld [vmem:[%s1838_s0 + $0x120] sm:$0xff]  ;;  %v51_v14 = vld [vmem:[%s1838_s0 + $0x128] sm:$0xff]  ;;  %v20_v15 = vld [vmem:[%s1838_s0 + $0x30] sm:$0xff] }
   0x6   :  { %1163 = vmatpush3.bf16.msra.mxu1 %v1158_v3  ;;  %v52_v16 = vld [vmem:[%s1838_s0 + $0x130] sm:$0xff]  ;;  %v21_v17 = vld [vmem:[%s1838_s0 + $0x38] sm:$0xff]  ;;  %v22_v19 = vld [vmem:[%s1838_s0 + $0x40] sm:$0xff]  ;;  %v659_v3 = vlaneseq }
   0x7   :  { %v53_v18 = vld [vmem:[%s1838_s0 + $0x138] sm:$0xff]  ;;  %v54_v20 = vld [vmem:[%s1838_s0 + $0x140] sm:$0xff]  ;;  %v23_v21 = vld [vmem:[%s1838_s0 + $0x48] sm:$0xff] }
   0x8   :  { %1063 = vmatmul.mubr.msk.f32.vlgmr.msra.gmra.mrb[0].mxu0 %vm80_vm0, %v15_v5  ;;  %v55_v22 = vld [vmem:[%s1838_s0 + $0x148] sm:$0xff]  ;;  %v24_v23 = vld [vmem:[%s1838_s0 + $0x50] sm:$0xff]  ;;  %v25_v25 = vld [vmem:[%s1838_s0 + $0x58] sm:$0xff]  ;;  %v660_v4 = vshrl.u32 %v659_v3, 7 }
   0x9   :  { %1111 = vmatmul.mubr.msk.f32.vlgmr.msra.gmra.mrb[0].mxu1 %vm80_vm0, %v47_v6  ;;  %1065 = vmatprep.mubr.msk.f32.mxu0 %vm80_vm0, %v16_v7  ;;  %v56_v24 = vld [vmem:[%s1838_s0 + $0x150] sm:$0xff]  ;;  %v57_v26 = vld [vmem:[%s1838_s0 + $0x158] sm:$0xff]  ;;  %v26_v27 = vld [vmem:[%s1838_s0 + $0x60] sm:$0xff] }
   0xa   :  { %1113 = vmatprep.mubr.msk.f32.mxu1 %vm80_vm0, %v48_v8  ;;  %v58_v28 = vld [vmem:[%s1838_s0 + $0x160] sm:$0xff]  ;;  %v27_v29 = vld [vmem:[%s1838_s0 + $0x68] sm:$0xff]  ;;  %v28_v31 = vld [vmem:[%s1838_s0 + $0x70] sm:$0xff]  ;;  %v661_v5 = vsub.s32 0, %v660_v4  ;;  %v729_v7 = vsub.s32 1, %v660_v4 }
   0xb   :  { %v59_v30 = vld [vmem:[%s1838_s0 + $0x168] sm:$0xff]  ;;  %v60_v32 = vld [vmem:[%s1838_s0 + $0x170] sm:$0xff]  ;;  %v29_v33 = vld [vmem:[%s1838_s0 + $0x78] sm:$0xff] }
   0xc   :  { %1066 = vmatmul.mubr.msk.f32.gmra.mrb[2].mxu0 %vm80_vm0, %v17_v9  ;;  %v61_v34 = vld [vmem:[%s1838_s0 + $0x178] sm:$0xff]  ;;  %v30_v35 = vld [vmem:[%s1838_s0 + $0x80] sm:$0xff]  ;;  %v31_v37 = vld [vmem:[%s1838_s0 + $0x88] sm:$0xff] }
   0xd   :  { %1114 = vmatmul.mubr.msk.f32.gmra.mrb[2].mxu1 %vm80_vm0, %v49_v10  ;;  %1068 = vmatprep.mubr.msk.f32.mxu0 %vm80_vm0, %v18_v11  ;;  %v62_v36 = vld [vmem:[%s1838_s0 + $0x180] sm:$0xff]  ;;  %v63_v38 = vld [vmem:[%s1838_s0 + $0x188] sm:$0xff]  ;;  %v32_v39 = vld [vmem:[%s1838_s0 + $0x90] sm:$0xff] }
   0xe   :  { %1116 = vmatprep.mubr.msk.f32.mxu1 %vm80_vm0, %v50_v12  ;;  %v64_v40 = vld [vmem:[%s1838_s0 + $0x190] sm:$0xff]  ;;  %v33_v41 = vld [vmem:[%s1838_s0 + $0x98] sm:$0xff]  ;;  %v34_v43 = vld [vmem:[%s1838_s0 + $0xa0] sm:$0xff] }
   0xf   :  { %v65_v42 = vld [vmem:[%s1838_s0 + $0x198] sm:$0xff]  ;;  %v66_v44 = vld [vmem:[%s1838_s0 + $0x1a0] sm:$0xff]  ;;  %v35_v45 = vld [vmem:[%s1838_s0 + $0xa8] sm:$0xff] }
  0x10   :  { %1069 = vmatmul.mubr.msk.f32.gmra.mrb[4].mxu0 %vm80_vm0, %v19_v13  ;;  %v67_v46 = vld [vmem:[%s1838_s0 + $0x1a8] sm:$0xff]  ;;  %v36_v47 = vld [vmem:[%s1838_s0 + $0xb0] sm:$0xff]  ;;  %v37_v49 = vld [vmem:[%s1838_s0 + $0xb8] sm:$0xff] }
  0x11   :  { %1117 = vmatmul.mubr.msk.f32.gmra.mrb[4].mxu1 %vm80_vm0, %v51_v14  ;;  %1071 = vmatprep.mubr.msk.f32.mxu0 %vm80_vm0, %v20_v15  ;;  %v68_v48 = vld [vmem:[%s1838_s0 + $0x1b0] sm:$0xff]  ;;  %v69_v50 = vld [vmem:[%s1838_s0 + $0x1b8] sm:$0xff]  ;;  %v38_v51 = vld [vmem:[%s1838_s0 + $0xc0] sm:$0xff] }
  0x12   :  { %1119 = vmatprep.mubr.msk.f32.mxu1 %vm80_vm0, %v52_v16  ;;  %v70_v52 = vld [vmem:[%s1838_s0 + $0x1c0] sm:$0xff]  ;;  %v39_v53 = vld [vmem:[%s1838_s0 + $0xc8] sm:$0xff]  ;;  %v40_v55 = vld [vmem:[%s1838_s0 + $0xd0] sm:$0xff] }
  0x13   :  { %v71_v54 = vld [vmem:[%s1838_s0 + $0x1c8] sm:$0xff]  ;;  %v72_v56 = vld [vmem:[%s1838_s0 + $0x1d0] sm:$0xff]  ;;  %v41_v57 = vld [vmem:[%s1838_s0 + $0xd8] sm:$0xff] }
  0x14   :  { %1072 = vmatmul.mubr.msk.f32.gmra.mrb[6].mxu0 %vm80_vm0, %v21_v17  ;;  %v73_v58 = vld [vmem:[%s1838_s0 + $0x1d8] sm:$0xff]  ;;  %v42_v59 = vld [vmem:[%s1838_s0 + $0xe0] sm:$0xff]  ;;  %v43_v61 = vld [vmem:[%s1838_s0 + $0xe8] sm:$0xff] }
  0x15   :  { %1120 = vmatmul.mubr.msk.f32.gmra.mrb[6].mxu1 %vm80_vm0, %v53_v18  ;;  %1074 = vmatprep.mubr.msk.f32.mxu0 %vm80_vm0, %v22_v19  ;;  %v74_v60 = vld [vmem:[%s1838_s0 + $0x1e0] sm:$0xff]  ;;  %v75_v62 = vld [vmem:[%s1838_s0 + $0x1e8] sm:$0xff]  ;;  %v44_v63 = vld [vmem:[%s1838_s0 + $0xf0] sm:$0xff] }
  0x16   :  { %1122 = vmatprep.mubr.msk.f32.mxu1 %vm80_vm0, %v54_v20  ;;  %v76_v0 = vld [vmem:[%s1838_s0 + $0x1f0] sm:$0xff]  ;;  %v45_v1 = vld [vmem:[%s1838_s0 + $0xf8] sm:$0xff]  ;;  %v658_v6 = vld [vmem:[%s1839_s2] sm:$0x3] }
  0x17   :  { %v77_v2 = vld [vmem:[%s1838_s0 + $0x1f8] sm:$0xff]  ;;  %v1449_v8 = vrot.slane %v658_v6, %v661_v5  ;;  %v1451_v9 = vrot.slane %v658_v6, %v729_v7 }
  0x18   :  { %1075 = vmatmul.mubr.msk.f32.gmra.mrb[8].mxu0 %vm80_vm0, %v23_v21 }
  0x19   :  { %1123 = vmatmul.mubr.msk.f32.gmra.mrb[8].mxu1 %vm80_vm0, %v55_v22  ;;  %1077 = vmatprep.mubr.msk.f32.mxu0 %vm80_vm0, %v24_v23 }
  0x1a   :  { %1125 = vmatprep.mubr.msk.f32.mxu1 %vm80_vm0, %v56_v24 }
  0x1c   :  { %1078 = vmatmul.mubr.msk.f32.gmra.mrb[10].mxu0 %vm80_vm0, %v25_v25 }
  0x1d   :  { %1126 = vmatmul.mubr.msk.f32.gmra.mrb[10].mxu1 %vm80_vm0, %v57_v26  ;;  %1080 = vmatprep.mubr.msk.f32.mxu0 %vm80_vm0, %v26_v27 }
  0x1e   :  { %1128 = vmatprep.mubr.msk.f32.mxu1 %vm80_vm0, %v58_v28 }
  0x20   :  { %1081 = vmatmul.mubr.msk.f32.gmra.mrb[12].mxu0 %vm80_vm0, %v27_v29 }
  0x21   :  { %1129 = vmatmul.mubr.msk.f32.gmra.mrb[12].mxu1 %vm80_vm0, %v59_v30  ;;  %1083 = vmatprep.mubr.msk.f32.mxu0 %vm80_vm0, %v28_v31 }
  0x22   :  { %1131 = vmatprep.mubr.msk.f32.mxu1 %vm80_vm0, %v60_v32 }
  0x24   :  { %1084 = vmatmul.mubr.msk.f32.gmra.mrb[14].mxu0 %vm80_vm0, %v29_v33 }
  0x25   :  { %1132 = vmatmul.mubr.msk.f32.gmra.mrb[14].mxu1 %vm80_vm0, %v61_v34  ;;  %1086 = vmatprep.mubr.msk.f32.mxu0 %vm80_vm0, %v30_v35 }
  0x26   :  { %1134 = vmatprep.mubr.msk.f32.mxu1 %vm80_vm0, %v62_v36 }
  0x28   :  { %1087 = vmatmul.mubr.msk.f32.gmra.mrb[16].mxu0 %vm80_vm0, %v31_v37 }
  0x29   :  { %1135 = vmatmul.mubr.msk.f32.gmra.mrb[16].mxu1 %vm80_vm0, %v63_v38  ;;  %1089 = vmatprep.mubr.msk.f32.mxu0 %vm80_vm0, %v32_v39 }
  0x2a   :  { %1137 = vmatprep.mubr.msk.f32.mxu1 %vm80_vm0, %v64_v40 }
  0x2c   :  { %1090 = vmatmul.mubr.msk.f32.gmra.mrb[18].mxu0 %vm80_vm0, %v33_v41 }
  0x2d   :  { %1138 = vmatmul.mubr.msk.f32.gmra.mrb[18].mxu1 %vm80_vm0, %v65_v42  ;;  %1092 = vmatprep.mubr.msk.f32.mxu0 %vm80_vm0, %v34_v43 }
  0x2e   :  { %1140 = vmatprep.mubr.msk.f32.mxu1 %vm80_vm0, %v66_v44 }
  0x30   :  { %1093 = vmatmul.mubr.msk.f32.gmra.mrb[20].mxu0 %vm80_vm0, %v35_v45 }
  0x31   :  { %1141 = vmatmul.mubr.msk.f32.gmra.mrb[20].mxu1 %vm80_vm0, %v67_v46  ;;  %1095 = vmatprep.mubr.msk.f32.mxu0 %vm80_vm0, %v36_v47 }
  0x32   :  { %1143 = vmatprep.mubr.msk.f32.mxu1 %vm80_vm0, %v68_v48 }
  0x34   :  { %1096 = vmatmul.mubr.msk.f32.gmra.mrb[22].mxu0 %vm80_vm0, %v37_v49 }
  0x35   :  { %1144 = vmatmul.mubr.msk.f32.gmra.mrb[22].mxu1 %vm80_vm0, %v69_v50  ;;  %1098 = vmatprep.mubr.msk.f32.mxu0 %vm80_vm0, %v38_v51 }
  0x36   :  { %1146 = vmatprep.mubr.msk.f32.mxu1 %vm80_vm0, %v70_v52 }
  0x38   :  { %1099 = vmatmul.mubr.msk.f32.gmra.mrb[24].mxu0 %vm80_vm0, %v39_v53 }
  0x39   :  { %1147 = vmatmul.mubr.msk.f32.gmra.mrb[24].mxu1 %vm80_vm0, %v71_v54  ;;  %1101 = vmatprep.mubr.msk.f32.mxu0 %vm80_vm0, %v40_v55 }
  0x3a   :  { %1149 = vmatprep.mubr.msk.f32.mxu1 %vm80_vm0, %v72_v56 }
  0x3c   :  { %1102 = vmatmul.mubr.msk.f32.gmra.mrb[26].mxu0 %vm80_vm0, %v41_v57 }
  0x3d   :  { %1150 = vmatmul.mubr.msk.f32.gmra.mrb[26].mxu1 %vm80_vm0, %v73_v58  ;;  %1104 = vmatprep.mubr.msk.f32.mxu0 %vm80_vm0, %v42_v59 }
  0x3e   :  { %1152 = vmatprep.mubr.msk.f32.mxu1 %vm80_vm0, %v74_v60 }
  0x40   :  { %1105 = vmatmul.mubr.msk.f32.gmra.mrb[28].mxu0 %vm80_vm0, %v43_v61 }
  0x41   :  { %1153 = vmatmul.mubr.msk.f32.gmra.mrb[28].mxu1 %vm80_vm0, %v75_v62  ;;  %1107 = vmatprep.mubr.msk.f32.mxu0 %vm80_vm0, %v44_v63 }
  0x42   :  { %1155 = vmatprep.mubr.msk.f32.mxu1 %vm80_vm0, %v76_v0 }
  0x44   :  { %1108 = vmatmul.mubr.msk.f32.gmra.mrb[30].mxu0 %vm80_vm0, %v45_v1 }
  0x45   :  { %1156 = vmatmul.mubr.msk.f32.gmra.mrb[30].mxu1 %vm80_vm0, %v77_v2 }
  0xdb   :  { %v1064_v10 = vpop.f32.mrb[0].mxu0 }
  0xdc   :  { %v1112_v11 = vpop.f32.mrb[0].mxu1  ;;  %v664_v12 = vmul.f32 %v1064_v10, %v1449_v8  ;;  %v339_v14 = vpop.f32.mrb[1].mxu0 }
  0xdd   :  { %v696_v13 = vmul.f32 %v1112_v11, %v1449_v8  ;;  %v499_v15 = vpop.f32.mrb[1].mxu1  ;;  %v663_v16 = vmul.f32 %v1449_v8, %v339_v14 }
  0xde   :  { %v695_v17 = vmul.f32 %v1449_v8, %v499_v15  ;;  %v732_v18 = vadd.f32 %v1451_v9, %v664_v12 }
  0xdf   :  { %v764_v19 = vadd.f32 %v1451_v9, %v696_v13  ;;  %v731_v20 = vadd.f32 %v1451_v9, %v663_v16  ;;  %v1067_v22 = vpop.f32.mrb[2].mxu0 }
  0xe0   :  { %v763_v21 = vadd.f32 %v1451_v9, %v695_v17  ;;  %v1115_v23 = vpop.f32.mrb[2].mxu1  ;;  %v796_v24 = vmax.f32 %v732_v18, 0.0  ;;  %v666_v26 = vmul.f32 %v1067_v22, %v1449_v8  ;;  %v349_v28 = vpop.f32.mrb[3].mxu0 }
  0xe1   :  { %v828_v25 = vmax.f32 %v764_v19, 0.0  ;;  %v698_v27 = vmul.f32 %v1115_v23, %v1449_v8  ;;  %v509_v29 = vpop.f32.mrb[3].mxu1  ;;  %v795_v30 = vmax.f32 %v731_v20, 0.0  ;;  %v665_v32 = vmul.f32 %v1449_v8, %v349_v28 }
  0xe2   :  { %v827_v31 = vmax.f32 %v763_v21, 0.0  ;;  %v697_v33 = vmul.f32 %v1449_v8, %v509_v29  ;;  %861 = vst.msk [vmem:[%s1840_s3 + $0x8] sm:$0xff] %vm859_vm1, %v796_v24  ;;  %v734_v34 = vadd.f32 %v1451_v9, %v666_v26 }
  0xe3   :  { %893 = vst.msk [vmem:[%s1840_s3 + $0x108] sm:$0xff] %vm859_vm1, %v828_v25  ;;  %v766_v35 = vadd.f32 %v1451_v9, %v698_v27  ;;  %860 = vst.msk [vmem:[%s1840_s3] sm:$0xff] %vm859_vm1, %v795_v30  ;;  %v733_v36 = vadd.f32 %v1451_v9, %v665_v32  ;;  %v1070_v38 = vpop.f32.mrb[4].mxu0 }
  0xe4   :  { %892 = vst.msk [vmem:[%s1840_s3 + $0x100] sm:$0xff] %vm859_vm1, %v827_v31  ;;  %v765_v37 = vadd.f32 %v1451_v9, %v697_v33  ;;  %v1118_v39 = vpop.f32.mrb[4].mxu1  ;;  %v798_v40 = vmax.f32 %v734_v34, 0.0  ;;  %v668_v42 = vmul.f32 %v1070_v38, %v1449_v8  ;;  %v359_v44 = vpop.f32.mrb[5].mxu0 }
  0xe5   :  { %v830_v41 = vmax.f32 %v766_v35, 0.0  ;;  %v700_v43 = vmul.f32 %v1118_v39, %v1449_v8  ;;  %v519_v45 = vpop.f32.mrb[5].mxu1  ;;  %v797_v46 = vmax.f32 %v733_v36, 0.0  ;;  %v667_v48 = vmul.f32 %v1449_v8, %v359_v44 }
  0xe6   :  { %v829_v47 = vmax.f32 %v765_v37, 0.0  ;;  %v699_v49 = vmul.f32 %v1449_v8, %v519_v45  ;;  %863 = vst.msk [vmem:[%s1840_s3 + $0x18] sm:$0xff] %vm859_vm1, %v798_v40  ;;  %v736_v50 = vadd.f32 %v1451_v9, %v668_v42 }
  0xe7   :  { %895 = vst.msk [vmem:[%s1840_s3 + $0x118] sm:$0xff] %vm859_vm1, %v830_v41  ;;  %v768_v51 = vadd.f32 %v1451_v9, %v700_v43  ;;  %862 = vst.msk [vmem:[%s1840_s3 + $0x10] sm:$0xff] %vm859_vm1, %v797_v46  ;;  %v735_v52 = vadd.f32 %v1451_v9, %v667_v48  ;;  %v1073_v54 = vpop.f32.mrb[6].mxu0 }
  0xe8   :  { %894 = vst.msk [vmem:[%s1840_s3 + $0x110] sm:$0xff] %vm859_vm1, %v829_v47  ;;  %v767_v53 = vadd.f32 %v1451_v9, %v699_v49  ;;  %v1121_v55 = vpop.f32.mrb[6].mxu1  ;;  %v800_v56 = vmax.f32 %v736_v50, 0.0  ;;  %v670_v58 = vmul.f32 %v1073_v54, %v1449_v8  ;;  %v369_v60 = vpop.f32.mrb[7].mxu0 }
  0xe9   :  { %v832_v57 = vmax.f32 %v768_v51, 0.0  ;;  %v702_v59 = vmul.f32 %v1121_v55, %v1449_v8  ;;  %v529_v61 = vpop.f32.mrb[7].mxu1  ;;  %v799_v62 = vmax.f32 %v735_v52, 0.0  ;;  %v669_v0 = vmul.f32 %v1449_v8, %v369_v60 }
  0xea   :  { %v831_v63 = vmax.f32 %v767_v53, 0.0  ;;  %v701_v1 = vmul.f32 %v1449_v8, %v529_v61  ;;  %865 = vst.msk [vmem:[%s1840_s3 + $0x28] sm:$0xff] %vm859_vm1, %v800_v56  ;;  %v738_v2 = vadd.f32 %v1451_v9, %v670_v58 }
  0xeb   :  { %897 = vst.msk [vmem:[%s1840_s3 + $0x128] sm:$0xff] %vm859_vm1, %v832_v57  ;;  %v770_v3 = vadd.f32 %v1451_v9, %v702_v59  ;;  %864 = vst.msk [vmem:[%s1840_s3 + $0x20] sm:$0xff] %vm859_vm1, %v799_v62  ;;  %v737_v4 = vadd.f32 %v1451_v9, %v669_v0  ;;  %v1076_v6 = vpop.f32.mrb[8].mxu0 }
  0xec   :  { %896 = vst.msk [vmem:[%s1840_s3 + $0x120] sm:$0xff] %vm859_vm1, %v831_v63  ;;  %v769_v5 = vadd.f32 %v1451_v9, %v701_v1  ;;  %v1124_v7 = vpop.f32.mrb[8].mxu1  ;;  %v802_v10 = vmax.f32 %v738_v2, 0.0  ;;  %v672_v12 = vmul.f32 %v1076_v6, %v1449_v8  ;;  %v379_v14 = vpop.f32.mrb[9].mxu0 }
  0xed   :  { %v834_v11 = vmax.f32 %v770_v3, 0.0  ;;  %v704_v13 = vmul.f32 %v1124_v7, %v1449_v8  ;;  %v539_v15 = vpop.f32.mrb[9].mxu1  ;;  %v801_v16 = vmax.f32 %v737_v4, 0.0  ;;  %v671_v18 = vmul.f32 %v1449_v8, %v379_v14 }
  0xee   :  { %v833_v17 = vmax.f32 %v769_v5, 0.0  ;;  %v703_v19 = vmul.f32 %v1449_v8, %v539_v15  ;;  %867 = vst.msk [vmem:[%s1840_s3 + $0x38] sm:$0xff] %vm859_vm1, %v802_v10  ;;  %v740_v20 = vadd.f32 %v1451_v9, %v672_v12 }
  0xef   :  { %899 = vst.msk [vmem:[%s1840_s3 + $0x138] sm:$0xff] %vm859_vm1, %v834_v11  ;;  %v772_v21 = vadd.f32 %v1451_v9, %v704_v13  ;;  %866 = vst.msk [vmem:[%s1840_s3 + $0x30] sm:$0xff] %vm859_vm1, %v801_v16  ;;  %v739_v22 = vadd.f32 %v1451_v9, %v671_v18  ;;  %v1079_v24 = vpop.f32.mrb[10].mxu0 }
  0xf0   :  { %898 = vst.msk [vmem:[%s1840_s3 + $0x130] sm:$0xff] %vm859_vm1, %v833_v17  ;;  %v771_v23 = vadd.f32 %v1451_v9, %v703_v19  ;;  %v1127_v25 = vpop.f32.mrb[10].mxu1  ;;  %v804_v26 = vmax.f32 %v740_v20, 0.0  ;;  %v674_v28 = vmul.f32 %v1079_v24, %v1449_v8  ;;  %v389_v30 = vpop.f32.mrb[11].mxu0 }
  0xf1   :  { %v836_v27 = vmax.f32 %v772_v21, 0.0  ;;  %v706_v29 = vmul.f32 %v1127_v25, %v1449_v8  ;;  %v549_v31 = vpop.f32.mrb[11].mxu1  ;;  %v803_v32 = vmax.f32 %v739_v22, 0.0  ;;  %v673_v34 = vmul.f32 %v1449_v8, %v389_v30 }
  0xf2   :  { %v835_v33 = vmax.f32 %v771_v23, 0.0  ;;  %v705_v35 = vmul.f32 %v1449_v8, %v549_v31  ;;  %869 = vst.msk [vmem:[%s1840_s3 + $0x48] sm:$0xff] %vm859_vm1, %v804_v26  ;;  %v742_v36 = vadd.f32 %v1451_v9, %v674_v28 }
  0xf3   :  { %901 = vst.msk [vmem:[%s1840_s3 + $0x148] sm:$0xff] %vm859_vm1, %v836_v27  ;;  %v774_v37 = vadd.f32 %v1451_v9, %v706_v29  ;;  %868 = vst.msk [vmem:[%s1840_s3 + $0x40] sm:$0xff] %vm859_vm1, %v803_v32  ;;  %v741_v38 = vadd.f32 %v1451_v9, %v673_v34  ;;  %v1082_v40 = vpop.f32.mrb[12].mxu0 }
  0xf4   :  { %900 = vst.msk [vmem:[%s1840_s3 + $0x140] sm:$0xff] %vm859_vm1, %v835_v33  ;;  %v773_v39 = vadd.f32 %v1451_v9, %v705_v35  ;;  %v1130_v41 = vpop.f32.mrb[12].mxu1  ;;  %v806_v42 = vmax.f32 %v742_v36, 0.0  ;;  %v676_v44 = vmul.f32 %v1082_v40, %v1449_v8  ;;  %v399_v46 = vpop.f32.mrb[13].mxu0 }
  0xf5   :  { %v838_v43 = vmax.f32 %v774_v37, 0.0  ;;  %v708_v45 = vmul.f32 %v1130_v41, %v1449_v8  ;;  %v559_v47 = vpop.f32.mrb[13].mxu1  ;;  %v805_v48 = vmax.f32 %v741_v38, 0.0  ;;  %v675_v50 = vmul.f32 %v1449_v8, %v399_v46 }
  0xf6   :  { %v837_v49 = vmax.f32 %v773_v39, 0.0  ;;  %v707_v51 = vmul.f32 %v1449_v8, %v559_v47  ;;  %871 = vst.msk [vmem:[%s1840_s3 + $0x58] sm:$0xff] %vm859_vm1, %v806_v42  ;;  %v744_v52 = vadd.f32 %v1451_v9, %v676_v44 }
  0xf7   :  { %903 = vst.msk [vmem:[%s1840_s3 + $0x158] sm:$0xff] %vm859_vm1, %v838_v43  ;;  %v776_v53 = vadd.f32 %v1451_v9, %v708_v45  ;;  %870 = vst.msk [vmem:[%s1840_s3 + $0x50] sm:$0xff] %vm859_vm1, %v805_v48  ;;  %v743_v54 = vadd.f32 %v1451_v9, %v675_v50  ;;  %v1085_v56 = vpop.f32.mrb[14].mxu0 }
  0xf8   :  { %902 = vst.msk [vmem:[%s1840_s3 + $0x150] sm:$0xff] %vm859_vm1, %v837_v49  ;;  %v775_v55 = vadd.f32 %v1451_v9, %v707_v51  ;;  %v1133_v57 = vpop.f32.mrb[14].mxu1  ;;  %v808_v58 = vmax.f32 %v744_v52, 0.0  ;;  %v678_v60 = vmul.f32 %v1085_v56, %v1449_v8  ;;  %v409_v62 = vpop.f32.mrb[15].mxu0 }
  0xf9   :  { %v840_v59 = vmax.f32 %v776_v53, 0.0  ;;  %v710_v61 = vmul.f32 %v1133_v57, %v1449_v8  ;;  %v569_v63 = vpop.f32.mrb[15].mxu1  ;;  %v807_v0 = vmax.f32 %v743_v54, 0.0  ;;  %v677_v2 = vmul.f32 %v1449_v8, %v409_v62 }
  0xfa   :  { %v839_v1 = vmax.f32 %v775_v55, 0.0  ;;  %v709_v3 = vmul.f32 %v1449_v8, %v569_v63  ;;  %873 = vst.msk [vmem:[%s1840_s3 + $0x68] sm:$0xff] %vm859_vm1, %v808_v58  ;;  %v746_v4 = vadd.f32 %v1451_v9, %v678_v60 }
  0xfb   :  { %905 = vst.msk [vmem:[%s1840_s3 + $0x168] sm:$0xff] %vm859_vm1, %v840_v59  ;;  %v778_v5 = vadd.f32 %v1451_v9, %v710_v61  ;;  %872 = vst.msk [vmem:[%s1840_s3 + $0x60] sm:$0xff] %vm859_vm1, %v807_v0  ;;  %v745_v6 = vadd.f32 %v1451_v9, %v677_v2  ;;  %v1088_v10 = vpop.f32.mrb[16].mxu0 }
  0xfc   :  { %904 = vst.msk [vmem:[%s1840_s3 + $0x160] sm:$0xff] %vm859_vm1, %v839_v1  ;;  %v777_v7 = vadd.f32 %v1451_v9, %v709_v3  ;;  %v1136_v11 = vpop.f32.mrb[16].mxu1  ;;  %v810_v12 = vmax.f32 %v746_v4, 0.0  ;;  %v680_v14 = vmul.f32 %v1088_v10, %v1449_v8  ;;  %v419_v16 = vpop.f32.mrb[17].mxu0 }
  0xfd   :  { %v842_v13 = vmax.f32 %v778_v5, 0.0  ;;  %v712_v15 = vmul.f32 %v1136_v11, %v1449_v8  ;;  %v579_v17 = vpop.f32.mrb[17].mxu1  ;;  %v809_v18 = vmax.f32 %v745_v6, 0.0  ;;  %v679_v20 = vmul.f32 %v1449_v8, %v419_v16 }
  0xfe   :  { %v841_v19 = vmax.f32 %v777_v7, 0.0  ;;  %v711_v21 = vmul.f32 %v1449_v8, %v579_v17  ;;  %875 = vst.msk [vmem:[%s1840_s3 + $0x78] sm:$0xff] %vm859_vm1, %v810_v12  ;;  %v748_v22 = vadd.f32 %v1451_v9, %v680_v14 }
  0xff   :  { %907 = vst.msk [vmem:[%s1840_s3 + $0x178] sm:$0xff] %vm859_vm1, %v842_v13  ;;  %v780_v23 = vadd.f32 %v1451_v9, %v712_v15  ;;  %874 = vst.msk [vmem:[%s1840_s3 + $0x70] sm:$0xff] %vm859_vm1, %v809_v18  ;;  %v747_v24 = vadd.f32 %v1451_v9, %v679_v20  ;;  %v1091_v26 = vpop.f32.mrb[18].mxu0 }
 0x100   :  { %906 = vst.msk [vmem:[%s1840_s3 + $0x170] sm:$0xff] %vm859_vm1, %v841_v19  ;;  %v779_v25 = vadd.f32 %v1451_v9, %v711_v21  ;;  %v1139_v27 = vpop.f32.mrb[18].mxu1  ;;  %v812_v28 = vmax.f32 %v748_v22, 0.0  ;;  %v682_v30 = vmul.f32 %v1091_v26, %v1449_v8  ;;  %v429_v32 = vpop.f32.mrb[19].mxu0 }
 0x101   :  { %v844_v29 = vmax.f32 %v780_v23, 0.0  ;;  %v714_v31 = vmul.f32 %v1139_v27, %v1449_v8  ;;  %v589_v33 = vpop.f32.mrb[19].mxu1  ;;  %v811_v34 = vmax.f32 %v747_v24, 0.0  ;;  %v681_v36 = vmul.f32 %v1449_v8, %v429_v32 }
 0x102   :  { %v843_v35 = vmax.f32 %v779_v25, 0.0  ;;  %v713_v37 = vmul.f32 %v1449_v8, %v589_v33  ;;  %877 = vst.msk [vmem:[%s1840_s3 + $0x88] sm:$0xff] %vm859_vm1, %v812_v28  ;;  %v750_v38 = vadd.f32 %v1451_v9, %v682_v30 }
 0x103   :  { %909 = vst.msk [vmem:[%s1840_s3 + $0x188] sm:$0xff] %vm859_vm1, %v844_v29  ;;  %v782_v39 = vadd.f32 %v1451_v9, %v714_v31  ;;  %876 = vst.msk [vmem:[%s1840_s3 + $0x80] sm:$0xff] %vm859_vm1, %v811_v34  ;;  %v749_v40 = vadd.f32 %v1451_v9, %v681_v36  ;;  %v1094_v42 = vpop.f32.mrb[20].mxu0 }
 0x104   :  { %908 = vst.msk [vmem:[%s1840_s3 + $0x180] sm:$0xff] %vm859_vm1, %v843_v35  ;;  %v781_v41 = vadd.f32 %v1451_v9, %v713_v37  ;;  %v1142_v43 = vpop.f32.mrb[20].mxu1  ;;  %v814_v44 = vmax.f32 %v750_v38, 0.0  ;;  %v684_v46 = vmul.f32 %v1094_v42, %v1449_v8  ;;  %v439_v48 = vpop.f32.mrb[21].mxu0 }
 0x105   :  { %v846_v45 = vmax.f32 %v782_v39, 0.0  ;;  %v716_v47 = vmul.f32 %v1142_v43, %v1449_v8  ;;  %v599_v49 = vpop.f32.mrb[21].mxu1  ;;  %v813_v50 = vmax.f32 %v749_v40, 0.0  ;;  %v683_v52 = vmul.f32 %v1449_v8, %v439_v48 }
 0x106   :  { %v845_v51 = vmax.f32 %v781_v41, 0.0  ;;  %v715_v53 = vmul.f32 %v1449_v8, %v599_v49  ;;  %879 = vst.msk [vmem:[%s1840_s3 + $0x98] sm:$0xff] %vm859_vm1, %v814_v44  ;;  %v752_v54 = vadd.f32 %v1451_v9, %v684_v46 }
 0x107   :  { %911 = vst.msk [vmem:[%s1840_s3 + $0x198] sm:$0xff] %vm859_vm1, %v846_v45  ;;  %v784_v55 = vadd.f32 %v1451_v9, %v716_v47  ;;  %878 = vst.msk [vmem:[%s1840_s3 + $0x90] sm:$0xff] %vm859_vm1, %v813_v50  ;;  %v751_v56 = vadd.f32 %v1451_v9, %v683_v52  ;;  %v1097_v58 = vpop.f32.mrb[22].mxu0 }
 0x108   :  { %910 = vst.msk [vmem:[%s1840_s3 + $0x190] sm:$0xff] %vm859_vm1, %v845_v51  ;;  %v783_v57 = vadd.f32 %v1451_v9, %v715_v53  ;;  %v1145_v59 = vpop.f32.mrb[22].mxu1  ;;  %v816_v60 = vmax.f32 %v752_v54, 0.0  ;;  %v686_v62 = vmul.f32 %v1097_v58, %v1449_v8  ;;  %v449_v0 = vpop.f32.mrb[23].mxu0 }
 0x109   :  { %v848_v61 = vmax.f32 %v784_v55, 0.0  ;;  %v718_v63 = vmul.f32 %v1145_v59, %v1449_v8  ;;  %v609_v1 = vpop.f32.mrb[23].mxu1  ;;  %v815_v2 = vmax.f32 %v751_v56, 0.0  ;;  %v685_v4 = vmul.f32 %v1449_v8, %v449_v0 }
 0x10a   :  { %v847_v3 = vmax.f32 %v783_v57, 0.0  ;;  %v717_v5 = vmul.f32 %v1449_v8, %v609_v1  ;;  %881 = vst.msk [vmem:[%s1840_s3 + $0xa8] sm:$0xff] %vm859_vm1, %v816_v60  ;;  %v754_v6 = vadd.f32 %v1451_v9, %v686_v62 }
 0x10b   :  { %913 = vst.msk [vmem:[%s1840_s3 + $0x1a8] sm:$0xff] %vm859_vm1, %v848_v61  ;;  %v786_v7 = vadd.f32 %v1451_v9, %v718_v63  ;;  %880 = vst.msk [vmem:[%s1840_s3 + $0xa0] sm:$0xff] %vm859_vm1, %v815_v2  ;;  %v753_v10 = vadd.f32 %v1451_v9, %v685_v4  ;;  %v1100_v12 = vpop.f32.mrb[24].mxu0 }
 0x10c   :  { %912 = vst.msk [vmem:[%s1840_s3 + $0x1a0] sm:$0xff] %vm859_vm1, %v847_v3  ;;  %v785_v11 = vadd.f32 %v1451_v9, %v717_v5  ;;  %v1148_v13 = vpop.f32.mrb[24].mxu1  ;;  %v818_v14 = vmax.f32 %v754_v6, 0.0  ;;  %v688_v16 = vmul.f32 %v1100_v12, %v1449_v8  ;;  %v459_v18 = vpop.f32.mrb[25].mxu0 }
 0x10d   :  { %v850_v15 = vmax.f32 %v786_v7, 0.0  ;;  %v720_v17 = vmul.f32 %v1148_v13, %v1449_v8  ;;  %v619_v19 = vpop.f32.mrb[25].mxu1  ;;  %v817_v20 = vmax.f32 %v753_v10, 0.0  ;;  %v687_v22 = vmul.f32 %v1449_v8, %v459_v18 }
 0x10e   :  { %v849_v21 = vmax.f32 %v785_v11, 0.0  ;;  %v719_v23 = vmul.f32 %v1449_v8, %v619_v19  ;;  %883 = vst.msk [vmem:[%s1840_s3 + $0xb8] sm:$0xff] %vm859_vm1, %v818_v14  ;;  %v756_v24 = vadd.f32 %v1451_v9, %v688_v16 }
 0x10f   :  { %915 = vst.msk [vmem:[%s1840_s3 + $0x1b8] sm:$0xff] %vm859_vm1, %v850_v15  ;;  %v788_v25 = vadd.f32 %v1451_v9, %v720_v17  ;;  %882 = vst.msk [vmem:[%s1840_s3 + $0xb0] sm:$0xff] %vm859_vm1, %v817_v20  ;;  %v755_v26 = vadd.f32 %v1451_v9, %v687_v22  ;;  %v1103_v28 = vpop.f32.mrb[26].mxu0 }
 0x110   :  { %914 = vst.msk [vmem:[%s1840_s3 + $0x1b0] sm:$0xff] %vm859_vm1, %v849_v21  ;;  %v787_v27 = vadd.f32 %v1451_v9, %v719_v23  ;;  %v1151_v29 = vpop.f32.mrb[26].mxu1  ;;  %v820_v30 = vmax.f32 %v756_v24, 0.0  ;;  %v690_v32 = vmul.f32 %v1103_v28, %v1449_v8  ;;  %v469_v34 = vpop.f32.mrb[27].mxu0 }
 0x111   :  { %v852_v31 = vmax.f32 %v788_v25, 0.0  ;;  %v722_v33 = vmul.f32 %v1151_v29, %v1449_v8  ;;  %v629_v35 = vpop.f32.mrb[27].mxu1  ;;  %v819_v36 = vmax.f32 %v755_v26, 0.0  ;;  %v689_v38 = vmul.f32 %v1449_v8, %v469_v34 }
 0x112   :  { %v851_v37 = vmax.f32 %v787_v27, 0.0  ;;  %v721_v39 = vmul.f32 %v1449_v8, %v629_v35  ;;  %885 = vst.msk [vmem:[%s1840_s3 + $0xc8] sm:$0xff] %vm859_vm1, %v820_v30  ;;  %v758_v40 = vadd.f32 %v1451_v9, %v690_v32 }
 0x113   :  { %917 = vst.msk [vmem:[%s1840_s3 + $0x1c8] sm:$0xff] %vm859_vm1, %v852_v31  ;;  %v790_v41 = vadd.f32 %v1451_v9, %v722_v33  ;;  %884 = vst.msk [vmem:[%s1840_s3 + $0xc0] sm:$0xff] %vm859_vm1, %v819_v36  ;;  %v757_v42 = vadd.f32 %v1451_v9, %v689_v38  ;;  %v1106_v44 = vpop.f32.mrb[28].mxu0 }
 0x114   :  { %916 = vst.msk [vmem:[%s1840_s3 + $0x1c0] sm:$0xff] %vm859_vm1, %v851_v37  ;;  %v789_v43 = vadd.f32 %v1451_v9, %v721_v39  ;;  %v1154_v45 = vpop.f32.mrb[28].mxu1  ;;  %v822_v46 = vmax.f32 %v758_v40, 0.0  ;;  %v692_v48 = vmul.f32 %v1106_v44, %v1449_v8  ;;  %v479_v50 = vpop.f32.mrb[29].mxu0 }
 0x115   :  { %v854_v47 = vmax.f32 %v790_v41, 0.0  ;;  %v724_v49 = vmul.f32 %v1154_v45, %v1449_v8  ;;  %v639_v51 = vpop.f32.mrb[29].mxu1  ;;  %v821_v52 = vmax.f32 %v757_v42, 0.0  ;;  %v691_v54 = vmul.f32 %v1449_v8, %v479_v50 }
 0x116   :  { %v853_v53 = vmax.f32 %v789_v43, 0.0  ;;  %v723_v55 = vmul.f32 %v1449_v8, %v639_v51  ;;  %887 = vst.msk [vmem:[%s1840_s3 + $0xd8] sm:$0xff] %vm859_vm1, %v822_v46  ;;  %v760_v56 = vadd.f32 %v1451_v9, %v692_v48 }
 0x117   :  { %919 = vst.msk [vmem:[%s1840_s3 + $0x1d8] sm:$0xff] %vm859_vm1, %v854_v47  ;;  %v792_v57 = vadd.f32 %v1451_v9, %v724_v49  ;;  %886 = vst.msk [vmem:[%s1840_s3 + $0xd0] sm:$0xff] %vm859_vm1, %v821_v52  ;;  %v759_v58 = vadd.f32 %v1451_v9, %v691_v54  ;;  %v1109_v60 = vpop.f32.mrb[30].mxu0 }
 0x118   :  { %918 = vst.msk [vmem:[%s1840_s3 + $0x1d0] sm:$0xff] %vm859_vm1, %v853_v53  ;;  %v791_v59 = vadd.f32 %v1451_v9, %v723_v55  ;;  %v1157_v61 = vpop.f32.mrb[30].mxu1  ;;  %v824_v62 = vmax.f32 %v760_v56, 0.0  ;;  %v694_v0 = vmul.f32 %v1109_v60, %v1449_v8  ;;  %v489_v2 = vpop.f32.mrb[31].mxu0 }
 0x119   :  { %v856_v63 = vmax.f32 %v792_v57, 0.0  ;;  %v726_v1 = vmul.f32 %v1157_v61, %v1449_v8  ;;  %v649_v3 = vpop.f32.mrb[31].mxu1  ;;  %v823_v4 = vmax.f32 %v759_v58, 0.0  ;;  %v693_v6 = vmul.f32 %v1449_v8, %v489_v2 }
 0x11a   :  { %v855_v5 = vmax.f32 %v791_v59, 0.0  ;;  %v725_v7 = vmul.f32 %v1449_v8, %v649_v3  ;;  %889 = vst.msk [vmem:[%s1840_s3 + $0xe8] sm:$0xff] %vm859_vm1, %v824_v62  ;;  %v762_v10 = vadd.f32 %v1451_v9, %v694_v0 }
 0x11b   :  { %921 = vst.msk [vmem:[%s1840_s3 + $0x1e8] sm:$0xff] %vm859_vm1, %v856_v63  ;;  %v794_v11 = vadd.f32 %v1451_v9, %v726_v1  ;;  %888 = vst.msk [vmem:[%s1840_s3 + $0xe0] sm:$0xff] %vm859_vm1, %v823_v4  ;;  %v761_v8 = vadd.f32 %v1451_v9, %v693_v6 }
 0x11c   :  { %920 = vst.msk [vmem:[%s1840_s3 + $0x1e0] sm:$0xff] %vm859_vm1, %v855_v5  ;;  %v793_v12 = vadd.f32 %v1451_v9, %v725_v7  ;;  %v826_v13 = vmax.f32 %v762_v10, 0.0 }
 0x11d   :  { %v858_v14 = vmax.f32 %v794_v11, 0.0  ;;  %v825_v15 = vmax.f32 %v761_v8, 0.0 }
 0x11e   :  { %v857_v16 = vmax.f32 %v793_v12, 0.0  ;;  %891 = vst.msk [vmem:[%s1840_s3 + $0xf8] sm:$0xff] %vm859_vm1, %v826_v13 }
 0x11f   :  { %923 = vst.msk [vmem:[%s1840_s3 + $0x1f8] sm:$0xff] %vm859_vm1, %v858_v14  ;;  %890 = vst.msk [vmem:[%s1840_s3 + $0xf0] sm:$0xff] %vm859_vm1, %v825_v15 }
 0x120   :  { %922 = vst.msk [vmem:[%s1840_s3 + $0x1f0] sm:$0xff] %vm859_vm1, %v857_v16 }

</bundles_post_ra>
